<compile_context>
chip_gen: v7x
topology: tpu7x:2x2x1
jax: 0.10.0
libtpu: 0.0.40
codegen_flags: <defaults>
</compile_context>

<pallas_src>
import jax
import jax.numpy as jnp
from jax.experimental import pallas as pl
from jax.experimental.pallas import tpu as pltpu

_EPS = 1e-7
_LANES = 128
# Below this total input size a single grid step is fine (per-step pipeline
# overhead dominates anyway); above it we keep >=2 steps on a parallel axis.
_SMALL_FOLD_BYTES = 1 << 20


def _vmem_budget():
    """Return (input-block byte budget, explicit vmem_limit_bytes) per TPU gen."""
    try:
        cap = int(pltpu.get_tpu_info().vmem_capacity_bytes)
    except Exception:
        cap = 64 * 1024 * 1024  # conservative (v7x-sized) fallback
    # Double-buffered in + out ~= 4x the input block; keep that near cap/4 and
    # leave the rest of the scoped limit for the in-kernel f32 chunk temps.
    target_block = max(1 << 20, min(cap // 16, 8 * 1024 * 1024))  # 8 MiB v5e/v6e, 4 MiB v7x
    vmem_limit = min(cap // 2, 64 * 1024 * 1024)                  # 64 MiB v5e/v6e, 32 MiB v7x
    return target_block, vmem_limit


def _choose_tiles(n, c, r, l, itemsize, target_block):
    """Pick (t_n, t_rows) for a (n, C, r, l) array tiled as (t_n, C, t_rows, l)."""
    # Sublane granularity for the second-to-last block dim (8 for f32, 16 bf16).
    sub = 8 if itemsize >= 4 else (16 if itemsize == 2 else 32)
    row_bytes = c * l * itemsize          # one sublane-row of the block, all channels
    sample_bytes = r * row_bytes
    total_bytes = n * sample_bytes

    if total_bytes <= _SMALL_FOLD_BYTES:
        return n, r                       # tiny workload: fold into one grid step
    if sample_bytes <= target_block:
        if n >= 2:
            # Block spans whole samples, but leave >=2 grid steps over batch so
            # both v7x TensorCores (megacore sharding) get work.
            t_n = max(1, min(n // 2, target_block // sample_bytes))
            return t_n, r
        # Single big sample: split the row axis into >=2 blocks instead.
        t_r = max(sub, ((r // 2) // sub) * sub)
        return 1, min(t_r, r)
    # Sample larger than the block budget: tile the row axis.
    t_r = max(sub, (target_block // row_bytes) // sub * sub)
    return 1, min(t_r, r)


def _make_kernel(power, c_chunk):
    p_int = int(power) if float(power) == int(power) else None

    def _pow_elem(xc):
        if p_int == 2:
            return xc * xc
        if p_int is not None and p_int >= 1:
            acc = xc
            for _ in range(p_int - 1):      # repeated VPU multiplies, no EUP exp/log
                acc = acc * xc
            return acc
        # Non-integer exponent: exp/log path (NaN for negative inputs, same as torch.pow).
        return jnp.power(xc, power)

    def kernel(x_ref, o_ref):
        # x_ref / o_ref block: (t_n, C, t_rows, L)
        C = x_ref.shape[1]
        # Pass 1: channel reduction in f32, chunked over C so sub-32-bit inputs
        # never materialize a full-block f32 temp.
        s = None
        for c0 in range(0, C, c_chunk):
            cc = min(c_chunk, C - c0)
            xc = x_ref[:, pl.ds(c0, cc)].astype(jnp.float32)
            part = jnp.sum(_pow_elem(xc), axis=1, keepdims=True)
            s = part if s is None else s + part
        norm = jnp.sqrt(s) if p_int == 2 else jnp.power(s, 1.0 / power)
        # One approximate (EUP) reciprocal per spatial position, broadcast over C.
        inv = pl.reciprocal(norm + _EPS, approx=True)
        # Pass 2: re-read the resident VMEM tile (vld headroom >> HBM) and store.
        for c0 in range(0, C, c_chunk):
            cc = min(c_chunk, C - c0)
            xc = x_ref[:, pl.ds(c0, cc)].astype(jnp.float32)
            o_ref[:, pl.ds(c0, cc)] = (xc * inv).astype(o_ref.dtype)

    return kernel


def normalize(x, power=2):
    """x: (N, C, H, W) -> channel-wise Lp-normalized output, same shape/dtype."""
    N, C, H, W = x.shape
    S = H * W
    itemsize = x.dtype.itemsize

    if S % _LANES == 0:
        # Lane-dense layout (no padding needed): full-lane unmasked stores.
        R, L = S // _LANES, _LANES
        x4 = x.reshape(N, C, R, L)
    else:
        # Ragged spatial size: keep full (H, W) as the trailing block dims
        # (no wrapper-side pad/slice => no extra HBM passes).
        R, L = H, W
        x4 = x

    target_block, vmem_limit = _vmem_budget()
    t_n, t_r = _choose_tiles(N, C, R, L, itemsize, target_block)

    grid = (pl.cdiv(N, t_n), pl.cdiv(R, t_r))
    block = (t_n, C, t_r, L)
    spec = pl.BlockSpec(block, lambda n, r: (n, 0, r, 0))

    # Chunk the channel axis so per-chunk f32 temps stay ~<=1 MiB.
    chan_f32_bytes = t_n * t_r * L * 4
    c_chunk = int(max(1, min(C, (1 << 20) // max(1, chan_f32_bytes))))

    out4 = pl.pallas_call(
        _make_kernel(power, c_chunk),
        out_shape=jax.ShapeDtypeStruct((N, C, R, L), x.dtype),
        grid_spec=pltpu.PrefetchScalarGridSpec(
            num_scalar_prefetch=0,
            grid=grid,
            in_specs=[spec],
            out_specs=spec,
        ),
        compiler_params=pltpu.CompilerParams(
            dimension_semantics=("parallel", "parallel"),
            vmem_limit_bytes=vmem_limit,
        ),
    )(x4)

    return out4.reshape(N, C, H, W)


def _reference(x, power=2):
    x32 = x.astype(jnp.float32)
    norm = jnp.power(jnp.sum(jnp.power(x32, power), axis=1, keepdims=True),
                     1.0 / power)
    return (x32 / (norm + _EPS)).astype(x.dtype)


if __name__ == "__main__":
    key = jax.random.PRNGKey(0)
    x = jax.random.normal(key, (2, 4, 16, 16), dtype=jnp.float32)

    out = normalize(x, power=2)
    jax.block_until_ready(out)

    ref = _reference(x, power=2)
    assert out.shape == x.shape and out.dtype == x.dtype
    # Tolerance loosened vs. exact math because the kernel uses the EUP
    # approximate reciprocal (pl.reciprocal(..., approx=True)).
    assert jnp.allclose(out, ref, atol=5e-3, rtol=5e-3), "mismatch vs reference"

    print("KERNEL_OK")
</pallas_src>

<mosaic_0001>
module attributes {stable_mosaic.version = 11 : i64} {
  func.func @kernel(%arg0: i32, %arg1: i32, %arg2: memref<2x4x2x128xf32, #tpu.memory_space<vmem>>, %arg3: memref<2x4x2x128xf32, #tpu.memory_space<vmem>>) attributes {dimension_semantics = [#tpu.dimension_semantics<parallel>, #tpu.dimension_semantics<parallel>], iteration_bounds = array<i64: 1, 1>, scalar_prefetch = 0 : i64, scratch_operands = 0 : i64, tpu.core_type = #tpu.core_type<tc>, window_params = [{transform_indices = @transform_0, window_bounds = array<i64: 2, 4, 2, 128>}, {transform_indices = @transform_1, window_bounds = array<i64: 2, 4, 2, 128>}]} {
    %c0 = arith.constant 0 : index
    %c0_0 = arith.constant 0 : index
    %c0_1 = arith.constant 0 : index
    %c0_2 = arith.constant 0 : index
    %0 = vector.load %arg2[%c0, %c0_0, %c0_1, %c0_2] : memref<2x4x2x128xf32, #tpu.memory_space<vmem>>, vector<2x4x2x128xf32>
    %1 = arith.mulf %0, %0 : vector<2x4x2x128xf32>
    %cst = arith.constant dense<0.000000e+00> : vector<2x2x128xf32>
    %2 = vector.multi_reduction <add>, %1, %cst [1] : vector<2x4x2x128xf32> to vector<2x2x128xf32>
    %3 = vector.shape_cast %2 : vector<2x2x128xf32> to vector<2x1x2x128xf32>
    %4 = math.sqrt %3 : vector<2x1x2x128xf32>
    %cst_3 = arith.constant 1.000000e-07 : f32
    %5 = vector.broadcast %cst_3 : f32 to vector<2x1x2x128xf32>
    %6 = arith.addf %4, %5 : vector<2x1x2x128xf32>
    %7 = tpu.reciprocal %6 {approx = true} : vector<2x1x2x128xf32> -> vector<2x1x2x128xf32>
    %c0_4 = arith.constant 0 : index
    %c0_5 = arith.constant 0 : index
    %c0_6 = arith.constant 0 : index
    %c0_7 = arith.constant 0 : index
    %8 = vector.load %arg2[%c0_4, %c0_5, %c0_6, %c0_7] : memref<2x4x2x128xf32, #tpu.memory_space<vmem>>, vector<2x4x2x128xf32>
    %9 = vector.broadcast %7 : vector<2x1x2x128xf32> to vector<2x4x2x128xf32>
    %10 = arith.mulf %8, %9 : vector<2x4x2x128xf32>
    %c0_8 = arith.constant 0 : index
    %c0_9 = arith.constant 0 : index
    %c0_10 = arith.constant 0 : index
    %c0_11 = arith.constant 0 : index
    %11 = vector.load %arg3[%c0_8, %c0_9, %c0_10, %c0_11] : memref<2x4x2x128xf32, #tpu.memory_space<vmem>>, vector<2x4x2x128xf32>
    tpu.vector_store %arg3[%c0_8, %c0_9, %c0_10, %c0_11], %10 {strides = array<i32>} : memref<2x4x2x128xf32, #tpu.memory_space<vmem>>, vector<2x4x2x128xf32>,
    return
  }
  func.func @transform_0(%arg0: i32, %arg1: i32) -> (i32, i32, i32, i32) {
    %c0_i32 = arith.constant 0 : i32
    %c0_i32_0 = arith.constant 0 : i32
    %c0_i32_1 = arith.constant 0 : i32
    return %arg0, %c0_i32, %arg1, %c0_i32_0 : i32, i32, i32, i32
  }
  func.func @transform_1(%arg0: i32, %arg1: i32) -> (i32, i32, i32, i32) {
    %c0_i32 = arith.constant 0 : i32
    %c0_i32_0 = arith.constant 0 : i32
    %c0_i32_1 = arith.constant 0 : i32
    return %arg0, %c0_i32, %arg1, %c0_i32_0 : i32, i32, i32, i32
  }
}

</mosaic_0001>

<bundles_post_ra>
// kernel: tpu_custom_call.1
= control target key start
LH: loop header
LB: loop body
LE: loop exit
PB: predicated region body
PF: predicated region fallthrough
CT: control target
= control target key end

     0   :  { %6 = vsyncpa [#allocation3], 0  ;;  %s217_s0 = inlined_call_operand.hbm [shape: f32[2,4,2,128], index: 0, kind: input, shape index: {}]   ;;  %s218_s1 = inlined_call_operand.hbm [shape: f32[2,4,2,128], index: 1, kind: output, shape index: {}]  }
   0x1   :  { %7 = vsyncpa [#allocation4], 0  ;;  %s165_s6 = smov [#allocation2]   ;;  %s117_s10 = scalar_lea.hbm %s217_s0, 256 }
   0x2   :  { %s13_s7 = sshll.u32 %s165_s6, 4  ;;  %p118_p0 = scmp.ne.s32.totalorder %s217_s0, %s117_s10  ;;  %s14_s7 = int_to_ptr.vmem [resolvable:$true] %s13_s7 }
   0x3   :  { %p121_p1 = scmp.lt.u32.totalorder %s117_s10, %s217_s0 }
   0x5   :  { %p123_p2 = pnand %p121_p1, %p118_p0 }
   0x7   :  { %126 = shalt.err (!%p123_p2)
}
   0x8   :  { %s127_s15 = scalar_lea.vmem %s14_s7, 256  ;;  %p132_p4 = scmp.lt.s32.totalorder %s14_s7, %s14_s7 }
   0x9   :  { %p128_p3 = scmp.ne.s32.totalorder %s14_s7, %s127_s15  ;;  %p133_p5 = scmp.lt.s32.totalorder %s127_s15, %s127_s15 }
   0xb   :  { %p134_p6 = por %p133_p5, %p132_p4 }
   0xd   :  { %p135_p7 = pnand %p134_p6, %p128_p3 }
   0xf   :  { %138 = shalt.err (!%p135_p7)
}
  0x10   :  { %s166_s16 = smov 32   ;;  %s167_s17 = smov 2  }
  0x11   :  { %19 = dma.hbm_to_vmem [thread:$0]  %s217_s0, 256, %s14_s7, [#allocation3], %s166_s16, %s166_s16, %s167_s17  }
  0x12   :  { %161 = dma.done.wait [#allocation3], 256  }
  0x13   :  { %162 = vsyncadd [#allocation3], 4294967040  ;;  %vm39_vm0 = vcmask 1041408   ;;  %v23_v0 = vld [vmem:[#allocation2] sm:$0x3]  ;;  %s168_s0 = smov [#allocation5]  }
  0x14   :  { %v24_v1 = vld [vmem:[#allocation2 + $0x2] sm:$0x3]  ;;  %v25_v2 = vld [vmem:[#allocation2 + $0x4] sm:$0x3]  ;;  %v26_v3 = vld [vmem:[#allocation2 + $0x6] sm:$0x3]  ;;  %v31_v4 = vmul.f32 %v23_v0, %v23_v0 }
  0x15   :  { %v32_v5 = vmul.f32 %v24_v1, %v24_v1  ;;  %v33_v6 = vmul.f32 %v25_v2, %v25_v2  ;;  %v27_v7 = vld [vmem:[#allocation2 + $0x8] sm:$0x3]  ;;  %v28_v8 = vld [vmem:[#allocation2 + $0xa] sm:$0x3]  ;;  %v34_v9 = vmul.f32 %v26_v3, %v26_v3  ;;  %v29_v10 = vld [vmem:[#allocation2 + $0xc] sm:$0x3] }
  0x16   :  { %v30_v11 = vld [vmem:[#allocation2 + $0xe] sm:$0x3]  ;;  %v35_v12 = vmul.f32 %v27_v7, %v27_v7  ;;  %v36_v13 = vmul.f32 %v28_v8, %v28_v8  ;;  %v40_v14 = vsel %vm39_vm0, %v31_v4, 0.0  ;;  %v37_v17 = vmul.f32 %v29_v10, %v29_v10  ;;  %s93_s20 = sshll.u32 %s168_s0, 4  ;;  %s94_s20 = int_to_ptr.vmem [resolvable:$true] %s93_s20 }
  0x17   :  { %v41_v15 = vsel %vm39_vm0, %v32_v5, 0.0  ;;  %v43_v16 = vsel %vm39_vm0, %v33_v6, 0.0  ;;  %v38_v19 = vmul.f32 %v30_v11, %v30_v11  ;;  %v45_v21 = vsel %vm39_vm0, %v34_v9, 0.0  ;;  %s139_s21 = scalar_lea.vmem %s94_s20, 256  ;;  %p144_p9 = scmp.lt.s32.totalorder %s94_s20, %s94_s20 }
  0x18   :  { %v42_v18 = vadd.f32 %v41_v15, %v40_v14  ;;  %v47_v20 = vsel %vm39_vm0, %v35_v12, 0.0  ;;  %v48_v22 = vsel %vm39_vm0, %v36_v13, 0.0  ;;  %v50_v23 = vsel %vm39_vm0, %v37_v17, 0.0  ;;  %p140_p8 = scmp.ne.s32.totalorder %s94_s20, %s139_s21  ;;  %p145_p10 = scmp.lt.s32.totalorder %s139_s21, %s139_s21 }
  0x19   :  { %v49_v25 = vadd.f32 %v48_v22, %v47_v20  ;;  %v52_v28 = vsel %vm39_vm0, %v38_v19, 0.0 }
  0x1a   :  { %v44_v24 = vadd.f32 %v43_v16, %v42_v18  ;;  %p146_p11 = por %p145_p10, %p144_p9 }
  0x1b   :  { %v51_v27 = vadd.f32 %v50_v23, %v49_v25 }
  0x1c   :  { %v46_v26 = vadd.f32 %v45_v21, %v44_v24  ;;  %p147_p12 = pnand %p146_p11, %p140_p8 }
  0x1d   :  { %v53_v29 = vadd.f32 %v52_v28, %v51_v27 }
  0x1e   :  { %109 = vrsqrt.f32 %v46_v26  ;;  %vm56_vm1 = vcmp.eq.f32.partialorder %v46_v26, inf  ;;  %v59_v31 = vand.u32 2147483648, %v46_v26  ;;  %vm58_vm2 = vcmp.eq.f32.partialorder %v46_v26, 0.0 }
  0x1f   :  { %111 = vrsqrt.f32 %v53_v29  ;;  %vm63_vm3 = vcmp.eq.f32.partialorder %v53_v29, inf  ;;  %v66_v35 = vand.u32 2147483648, %v53_v29  ;;  %vm65_vm4 = vcmp.eq.f32.partialorder %v53_v29, 0.0 }
  0x28   :  { %v110_v30 = vpop.eup %109 }
  0x29   :  { %v55_v32 = vmul.f32 %v110_v30, %v46_v26  ;;  %v112_v33 = vpop.eup %111 }
  0x2a   :  { %v62_v37 = vmul.f32 %v112_v33, %v53_v29 }
  0x2b   :  { %v57_v34 = vsel %vm56_vm1, %v46_v26, %v55_v32 }
  0x2c   :  { %v60_v36 = vsel %vm58_vm2, %v59_v31, %v57_v34  ;;  %v64_v39 = vsel %vm63_vm3, %v53_v29, %v62_v37 }
  0x2d   :  { %v68_v38 = vadd.f32 1e-07, %v60_v36  ;;  %v67_v40 = vsel %vm65_vm4, %v66_v35, %v64_v39 }
  0x2e   :  { %v69_v41 = vadd.f32 1e-07, %v67_v40 }
  0x2f   :  { %113 = vrcp.f32 %v68_v38 }
  0x30   :  { %115 = vrcp.f32 %v69_v41 }
  0x39   :  { %v114_v42 = vpop.eup %113 }
  0x3a   :  { %v72_v43 = vmul.f32 %v114_v42, %v23_v0  ;;  %v73_v44 = vmul.f32 %v114_v42, %v24_v1  ;;  %v74_v45 = vmul.f32 %v114_v42, %v25_v2  ;;  %v75_v46 = vmul.f32 %v114_v42, %v26_v3  ;;  %v116_v47 = vpop.eup %115 }
  0x3b   :  { %v76_v48 = vmul.f32 %v116_v47, %v27_v7  ;;  %v77_v49 = vmul.f32 %v116_v47, %v28_v8  ;;  %v78_v50 = vmul.f32 %v116_v47, %v29_v10  ;;  %v79_v51 = vmul.f32 %v116_v47, %v30_v11 }
  0x3c   :  { %80 = vst [vmem:[#allocation5] sm:$0x3] %v72_v43  ;;  %81 = vst [vmem:[#allocation5 + $0x2] sm:$0x3] %v73_v44 }
  0x3d   :  { %82 = vst [vmem:[#allocation5 + $0x4] sm:$0x3] %v74_v45  ;;  %83 = vst [vmem:[#allocation5 + $0x6] sm:$0x3] %v75_v46 }
  0x3e   :  { %84 = vst [vmem:[#allocation5 + $0x8] sm:$0x3] %v76_v48  ;;  %85 = vst [vmem:[#allocation5 + $0xa] sm:$0x3] %v77_v49 }
  0x3f   :  { %86 = vst [vmem:[#allocation5 + $0xc] sm:$0x3] %v78_v50  ;;  %87 = vst [vmem:[#allocation5 + $0xe] sm:$0x3] %v79_v51 }
  0x40   :  { %150 = shalt.err (!%p147_p12)
}
  0x41   :  { %s151_s24 = scalar_lea.hbm %s218_s1, 256 }
  0x42   :  { %p152_p13 = scmp.ne.s32.totalorder %s218_s1, %s151_s24  ;;  %p155_p0 = scmp.lt.u32.totalorder %s151_s24, %s218_s1 }
  0x44   :  { %p157_p1 = pnand %p155_p0, %p152_p13 }
  0x46   :  { %160 = shalt.err (!%p157_p1)
}
  0x47   :  { %99 = dma.vmem_to_hbm [thread:$0]  %s94_s20, 256, %s218_s1, [#allocation4], %s166_s16, %s166_s16, %s167_s17  }
  0x48   :  { %163 = dma.done.wait [#allocation4], 256  }
  0x49   :  { %164 = vsyncadd [#allocation4], 4294967040 }
  0x4a   :  { %103 = vsyncpa [#allocation3], 1 }
  0x4b   :  { %104 = vsyncpa [#allocation4], 1 }

</bundles_post_ra>
